<compile_context>
chip_gen: v5e
topology: v5e:2x2
jax: 0.10.0
libtpu: 0.0.40
codegen_flags: <defaults>
</compile_context>

<pallas_src>
import jax
import jax.numpy as jnp
from jax.experimental import pallas as pl
from jax.experimental.pallas import tpu as pltpu

SUBLANE = 8


def fused_linear_kernel(x_ref, w_ref, b_ref, out_ref):
    # One fused matmul over the folded weights + in-kernel bias add.
    # x_ref: (tb, K), w_ref: (K, N), b_ref: (1, N), out_ref: (tb, N).
    out_ref[...] = (
        jnp.dot(x_ref[...], w_ref[...], preferred_element_type=jnp.float32)
        + b_ref[...]
    ).astype(out_ref.dtype)


def torch_model_forward(x, w1_t, b1, w2_t, b2, *, batch_tile=2048):
    """Forward of TorchModel.

    x:    (B, in)
    w1_t: (in, h1), b1: (1, h1)   (PyTorch layer1.weight transposed)
    w2_t: (h1, h2), b2: (1, h2)   (PyTorch layer2.weight transposed)
    Returns (B, h2) float32.
    """
    # ---- fold the two linear layers (trace-time, weights are tiny) --------
    w = (w1_t @ w2_t).astype(jnp.float32)        # (K, N)
    b = (b1 @ w2_t + b2).astype(jnp.float32)     # (1, N)

    x = x.astype(jnp.float32)
    B, K = x.shape
    N = w.shape[1]

    # ---- batch tiling ------------------------------------------------------
    # Sublane-aligned rows; keep >=2 grid steps when the batch allows so both
    # TensorCores on v7x get a share (no-op for v5e/v6e single-TC chips).
    b_rows = pl.cdiv(B, SUBLANE) * SUBLANE
    tb = min(batch_tile, b_rows)
    if b_rows >= 2 * SUBLANE and b_rows // tb < 2:
        tb = pl.cdiv(pl.cdiv(b_rows, 2), SUBLANE) * SUBLANE
    b_pad = pl.cdiv(b_rows, tb) * tb

    # Row-pad x only when needed (no ones-column, no lane padding, no extra
    # HBM pass when B is already a tile multiple).
    if b_pad != B:
        x_p = jnp.zeros((b_pad, K), jnp.float32).at[:B, :].set(x)
    else:
        x_p = x

    grid = (b_pad // tb,)
    cost = pl.CostEstimate(
        flops=2 * b_pad * K * N + b_pad * N,
        transcendentals=0,
        bytes_accessed=4 * (b_pad * K + K * N + N + b_pad * N),
    )

    out = pl.pallas_call(
        fused_linear_kernel,
        out_shape=jax.ShapeDtypeStruct((b_pad, N), jnp.float32),
        grid_spec=pltpu.PrefetchScalarGridSpec(
            num_scalar_prefetch=0,
            grid=grid,
            in_specs=[
                # batch tile marches over the grid axis
                pl.BlockSpec((tb, K), lambda i: (i, 0)),
                # folded weights / bias pinned (same block every step)
                pl.BlockSpec((K, N), lambda i: (0, 0)),
                pl.BlockSpec((1, N), lambda i: (0, 0)),
            ],
            out_specs=pl.BlockSpec((tb, N), lambda i: (i, 0)),
        ),
        compiler_params=pltpu.CompilerParams(
            dimension_semantics=("parallel",)),
        cost_estimate=cost,
    )(x_p, w, b)

    # Rows-only epilogue slice (only valid bytes); free when B == b_pad.
    return out[:B] if b_pad != B else out


if __name__ == "__main__":
    input_size, hidden_size1, hidden_size2 = 3, 5, 2

    # Deterministic parameter init (PyTorch-Linear-like uniform bounds).
    key = jax.random.PRNGKey(0)
    k1, k2, k3, k4 = jax.random.split(key, 4)
    bound1 = 1.0 / (input_size ** 0.5)
    bound2 = 1.0 / (hidden_size1 ** 0.5)
    # PyTorch stores layer1.weight as (5,3); we keep the transposed (3,5) form.
    w1_t = jax.random.uniform(k1, (input_size, hidden_size1), jnp.float32,
                              -bound1, bound1)
    b1 = jax.random.uniform(k2, (1, hidden_size1), jnp.float32, -bound1, bound1)
    w2_t = jax.random.uniform(k3, (hidden_size1, hidden_size2), jnp.float32,
                              -bound2, bound2)
    b2 = jax.random.uniform(k4, (1, hidden_size2), jnp.float32, -bound2, bound2)

    # Same input as the reference script (batch=3, features=3).
    x = jnp.array([[3.1, 1.3, 1.2],
                   [2.1, 1.3, 13.0],
                   [2.1, 1.3, 13.0]], dtype=jnp.float32)

    y_pred = torch_model_forward(x, w1_t, b1, w2_t, b2)
    y_pred = jax.block_until_ready(y_pred)

    # Reference check in plain JAX (same math as the PyTorch forward).
    y_ref = (x @ w1_t + b1) @ w2_t + b2
    assert y_pred.shape == (3, hidden_size2)
    assert jnp.allclose(y_pred, y_ref, atol=1e-5), (y_pred, y_ref)

    # Exercise the multi-step grid path (two+ tiles, no pad, no epilogue copy).
    xb = jax.random.normal(jax.random.PRNGKey(1), (1024, input_size),
                           jnp.float32)
    yb = jax.block_until_ready(torch_model_forward(xb, w1_t, b1, w2_t, b2))
    yb_ref = (xb @ w1_t + b1) @ w2_t + b2
    assert yb.shape == (1024, hidden_size2)
    assert jnp.allclose(yb, yb_ref, atol=1e-4), "large-batch mismatch"

    print("KERNEL_OK")
</pallas_src>

<mosaic_0001>
module attributes {stable_mosaic.version = 11 : i64} {
  func.func @fused_linear_kernel(%arg0: i32, %arg1: memref<8x3xf32, #tpu.memory_space<vmem>>, %arg2: memref<3x2xf32, #tpu.memory_space<vmem>>, %arg3: memref<1x2xf32, #tpu.memory_space<vmem>>, %arg4: memref<8x2xf32, #tpu.memory_space<vmem>>) attributes {dimension_semantics = [#tpu.dimension_semantics<parallel>], iteration_bounds = array<i64: 1>, scalar_prefetch = 0 : i64, scratch_operands = 0 : i64, tpu.core_type = #tpu.core_type<tc>, window_params = [{transform_indices = @transform_0, window_bounds = array<i64: 8, 3>}, {pipeline_mode = #tpu.pipeline_mode<synchronous>, transform_indices = @transform_1, window_bounds = array<i64: 3, 2>}, {pipeline_mode = #tpu.pipeline_mode<synchronous>, transform_indices = @transform_2, window_bounds = array<i64: 1, 2>}, {transform_indices = @transform_3, window_bounds = array<i64: 8, 2>}]} {
    %c0 = arith.constant 0 : index
    %c0_0 = arith.constant 0 : index
    %0 = vector.load %arg1[%c0, %c0_0] : memref<8x3xf32, #tpu.memory_space<vmem>>, vector<8x3xf32>
    %c0_1 = arith.constant 0 : index
    %c0_2 = arith.constant 0 : index
    %1 = vector.load %arg2[%c0_1, %c0_2] : memref<3x2xf32, #tpu.memory_space<vmem>>, vector<3x2xf32>
    %cst = arith.constant dense<0.000000e+00> : vector<8x2xf32>
    %2 = tpu.matmul %0, %1, %cst {dimension_numbers = #tpu.dot_dimension_numbers<[1], [0], [0], [1], [0, 0, 1, 1], [], []>} : vector<8x3xf32>, vector<3x2xf32>, vector<8x2xf32> -> vector<8x2xf32>
    %c0_3 = arith.constant 0 : index
    %c0_4 = arith.constant 0 : index
    %3 = vector.load %arg3[%c0_3, %c0_4] : memref<1x2xf32, #tpu.memory_space<vmem>>, vector<1x2xf32>
    %4 = vector.broadcast %3 : vector<1x2xf32> to vector<8x2xf32>
    %5 = arith.addf %2, %4 : vector<8x2xf32>
    %c0_5 = arith.constant 0 : index
    %c0_6 = arith.constant 0 : index
    %6 = vector.load %arg4[%c0_5, %c0_6] : memref<8x2xf32, #tpu.memory_space<vmem>>, vector<8x2xf32>
    tpu.vector_store %arg4[%c0_5, %c0_6], %5 {strides = array<i32>} : memref<8x2xf32, #tpu.memory_space<vmem>>, vector<8x2xf32>,
    return
  }
  func.func @transform_0(%arg0: i32) -> (i32, i32) {
    %c0_i32 = arith.constant 0 : i32
    %c0_i32_0 = arith.constant 0 : i32
    return %arg0, %c0_i32 : i32, i32
  }
  func.func @transform_1(%arg0: i32) -> (i32, i32) {
    %c0_i32 = arith.constant 0 : i32
    %c0_i32_0 = arith.constant 0 : i32
    %c0_i32_1 = arith.constant 0 : i32
    return %c0_i32, %c0_i32_0 : i32, i32
  }
  func.func @transform_2(%arg0: i32) -> (i32, i32) {
    %c0_i32 = arith.constant 0 : i32
    %c0_i32_0 = arith.constant 0 : i32
    %c0_i32_1 = arith.constant 0 : i32
    return %c0_i32, %c0_i32_0 : i32, i32
  }
  func.func @transform_3(%arg0: i32) -> (i32, i32) {
    %c0_i32 = arith.constant 0 : i32
    %c0_i32_0 = arith.constant 0 : i32
    return %arg0, %c0_i32 : i32, i32
  }
}

</mosaic_0001>

<bundles_post_ra>
// kernel: tpu_custom_call.1
= control target key start
LH: loop header
LB: loop body
LE: loop exit
PB: predicated region body
PF: predicated region fallthrough
CT: control target
= control target key end

     0   :  { %vm24_vm0 = vcmask 1042432   ;;  %vm20_vm1 = vcmask 23552   ;;  %vm48_vm2 = vcmask 15360   ;;  %s89_s1 = inlined_call_operand.vmem [shape: f32[3,2], index: 1, kind: input, shape index: {}]   ;;  %s90_s0 = inlined_call_operand.vmem [shape: f32[8,3], index: 0, kind: input, shape index: {}]   ;;  %s91_s2 = inlined_call_operand.vmem [shape: f32[1,2], index: 2, kind: input, shape index: {}]   ;;  %s92_s3 = inlined_call_operand.vmem [shape: f32[8,2], index: 3, kind: output, shape index: {}]  }
   0x1   :  { %v15_v0 = vld [vmem:[%s89_s1] sm:$0x7] }
   0x2   :  { %v14_v1 = vld [vmem:[%s90_s0] sm:$0xff]  ;;  %54 = vmatpush.msk.msra.mxu0 %vm24_vm0, %v15_v0 }
   0x3   :  { %55 = vmatmul.msk.f32.vlgmr.msra.gmra.mxu0 %vm20_vm1, %v14_v1  ;;  %v56_v2 = vld [vmem:[%s91_s2] ss:$0 sm:$0xff] }
  0x80   :  { %v45_v3 = vpop.f32.mrf.mxu0 }
  0x81   :  { %v46_v4 = vadd.f32 %v56_v2, %v45_v3 }
  0x83   :  { %49 = vst.msk [vmem:[%s92_s3] sm:$0xff] %vm48_vm2, %v46_v4 }

</bundles_post_ra>
